<compile_context>
chip_gen: v5e
topology: v5e:2x2
jax: 0.10.0
libtpu: 0.0.40
codegen_flags: <defaults>
</compile_context>

<pallas_src>
import functools

import jax
import jax.numpy as jnp
from jax import lax
from jax.experimental import pallas as pl
from jax.experimental.pallas import tpu as pltpu


def _supcon_kernel(labcol_ref, labrow_ref, featq_ref, featk_ref, out_ref,
                   m_ref, sall_ref, spos_ref, cpos_ref, *, tk, k_resident):
    qi = pl.program_id(0)
    ki = pl.program_id(1)
    tq = featq_ref.shape[0]

    # --- new q block: reset the streaming accumulators -----------------------
    @pl.when(ki == 0)
    def _init():
        m_ref[...] = jnp.full(m_ref.shape, -jnp.inf, dtype=jnp.float32)
        sall_ref[...] = jnp.zeros_like(sall_ref)
        spos_ref[...] = jnp.zeros_like(spos_ref)
        cpos_ref[...] = jnp.zeros_like(cpos_ref)

    # --- contrast tile: slice the VMEM-resident block, or take the streamed
    #     per-step block (already normalized bf16, no per-tile math needed) ---
    if k_resident:
        k0 = pl.multiple_of(ki * tk, tk)        # sublane-dim dynamic slice
        fk = featk_ref[pl.ds(k0, tk), :]
    else:
        fk = featk_ref[...]

    # logits tile (tq, tk): bf16 MXU matmul with f32 accumulation.
    # 1/temperature is already folded into featq by the wrapper.
    s = jnp.einsum("qd,kd->qk", featq_ref[...], fk,
                   preferred_element_type=jnp.float32)

    # Self-pair (global diagonal) removal: one compare against a scalar offset.
    col_minus_row = (lax.broadcasted_iota(jnp.int32, (tq, tk), 1)
                     - lax.broadcasted_iota(jnp.int32, (tq, tk), 0))
    is_diag = col_minus_row == (qi * tq - ki * tk)
    s = jnp.where(is_diag, -jnp.inf, s)

    # Label-equality mask via pure VPU broadcast: (tq, 1) vs (1, tk).
    eq = labcol_ref[...] == labrow_ref[...]

    # --- online masked logsumexp: a single exp pass per tile -----------------
    m_prev = m_ref[...]
    m_new = jnp.maximum(m_prev, jnp.max(s, axis=1, keepdims=True))
    alpha = jnp.exp(m_prev - m_new)
    e = jnp.exp(s - m_new)                         # diagonal -> exp(-inf) = 0
    sall_ref[...] = alpha * sall_ref[...] + jnp.sum(e, axis=1, keepdims=True)
    # diagonal already contributes 0 through e, so masking with eq alone is exact
    spos_ref[...] = alpha * spos_ref[...] + jnp.sum(jnp.where(eq, e, 0.0),
                                                    axis=1, keepdims=True)
    # exact same-label count (includes self exactly once over the whole row)
    cpos_ref[...] = cpos_ref[...] + jnp.sum(eq.astype(jnp.float32),
                                            axis=1, keepdims=True)
    m_ref[...] = m_new

    # --- finalize this q block ------------------------------------------------
    @pl.when(ki == pl.num_programs(1) - 1)
    def _finalize():
        s_all = sall_ref[...]                                     # (tq, 1)
        s_pos = jnp.maximum(spos_ref[...], jnp.finfo(jnp.float32).tiny)
        has_pos = cpos_ref[...] >= 2.0     # >= 1 positive besides self (exact)
        # -log_prob = log(sum_all) - log(sum_pos); the shared rowmax cancels.
        num = jnp.where(has_pos, jnp.log(s_all) - jnp.log(s_pos), 0.0)
        npos = has_pos.astype(jnp.float32)
        lane = lax.broadcasted_iota(jnp.int32, (tq, 128), 1)
        out_ref[...] = jnp.where(lane == 0, num,
                                 jnp.where(lane == 1, npos, 0.0))


def _pick_tile_q(b):
    # Multiple of 8 sublanes (or full b); keep nq = b // tq >= 2 when possible
    # so the "parallel" q axis can split across both TensorCores on v7x.
    for t in (256, 128, 64, 32, 16, 8):
        if b % t == 0 and b // t >= 2:
            return t
    return b


def _pick_tile_k(b):
    # Multiple of 128 lanes (or full b) to satisfy the (8, 128) constraint.
    for t in (512, 256, 128):
        if b % t == 0:
            return t
    return b


def supcon_loss(features, labels, temperature=0.2, block_q=None, block_k=None,
                k_resident=None, k_resident_budget_bytes=8 * 1024 * 1024):
    """features: [B, D] float, labels: [B] int -> scalar float32 loss."""
    assert features.ndim == 2, "`features` needs to be [bsz, feature_dim]"
    assert labels.ndim == 1, "`labels` needs to be shape [bsz]"
    assert features.shape[0] == labels.shape[0]
    B, D = features.shape
    inv_temp = 1.0 / float(temperature)

    # Normalize once (f32 math), fold 1/temperature into the anchor side, and
    # hand the MXU bf16 operands (accumulation stays f32 inside the kernel).
    f32 = features.astype(jnp.float32)
    inv_norm = lax.rsqrt(jnp.sum(f32 * f32, axis=1, keepdims=True))
    fn = f32 * inv_norm
    feat_q = (fn * inv_temp).astype(jnp.bfloat16)
    feat_k = fn.astype(jnp.bfloat16)

    tq = block_q if block_q is not None else _pick_tile_q(B)
    tk = block_k if block_k is not None else _pick_tile_k(B)
    assert B % tq == 0 and B % tk == 0
    assert tq == B or tq % 8 == 0
    assert tk == B or tk % 128 == 0
    nq, nk = B // tq, B // tk

    # Contrast features stay VMEM-resident when they fit the budget (read from
    # HBM once instead of nq times); otherwise stream (tk, D) tiles.
    if k_resident is None:
        k_resident = (B * D * 2) <= k_resident_budget_bytes

    labels_i32 = labels.astype(jnp.int32)
    lab_col = labels_i32.reshape(B, 1)
    lab_row = labels_i32.reshape(1, B)

    featk_spec = (pl.BlockSpec((B, D), lambda qi, ki: (0, 0)) if k_resident
                  else pl.BlockSpec((tk, D), lambda qi, ki: (ki, 0)))

    # Rough VMEM budget (x2 for double-buffering + generous (tq, tk) temps),
    # capped at 64 MiB so the same configuration also fits v7x.
    est = ((B * D if k_resident else tk * D) * 2 * 2      # contrast feats
           + tq * D * 2 * 2                                # anchor feats
           + tq * 128 * 4 * 2                              # output block
           + (tq + tk) * 4 * 2                             # label blocks
           + 4 * tq * 4                                    # accumulators
           + 8 * tq * tk * 4)                              # live temporaries
    vmem_limit = int(min(64 * 1024 * 1024, max(32 * 1024 * 1024, 2 * est)))

    out = pl.pallas_call(
        functools.partial(_supcon_kernel, tk=tk, k_resident=k_resident),
        out_shape=jax.ShapeDtypeStruct((B, 128), jnp.float32),
        grid_spec=pltpu.PrefetchScalarGridSpec(
            num_scalar_prefetch=0,
            grid=(nq, nk),
            in_specs=[
                pl.BlockSpec((tq, 1), lambda qi, ki: (qi, 0)),   # labels (col)
                pl.BlockSpec((1, tk), lambda qi, ki: (0, ki)),   # labels (row)
                pl.BlockSpec((tq, D), lambda qi, ki: (qi, 0)),   # anchor feats
                featk_spec,                                      # contrast feats
            ],
            out_specs=pl.BlockSpec((tq, 128), lambda qi, ki: (qi, 0)),
            scratch_shapes=[
                pltpu.VMEM((tq, 1), jnp.float32),   # running rowmax
                pltpu.VMEM((tq, 1), jnp.float32),   # running sum_all
                pltpu.VMEM((tq, 1), jnp.float32),   # running sum_pos
                pltpu.VMEM((tq, 1), jnp.float32),   # exact positive count
            ],
        ),
        compiler_params=pltpu.CompilerParams(
            dimension_semantics=("parallel", "arbitrary"),
            vmem_limit_bytes=vmem_limit),
    )(lab_col, lab_row, feat_q, feat_k)

    num = out[:, 0]      # per-row  -(log_prob) * n_pos
    npos = out[:, 1]     # per-row  n_pos indicator
    return jnp.sum(num) / (jnp.sum(npos) + 1e-8)


def _supcon_loss_ref(features, labels, temperature=0.2):
    # Pure-JAX f32 reference mirroring the PyTorch forward (two-pass logsumexp).
    f = features.astype(jnp.float32)
    fn = f / jnp.linalg.norm(f, axis=1, keepdims=True)
    B = f.shape[0]
    logits = (fn @ fn.T) / temperature
    logits_mask = 1.0 - jnp.eye(B, dtype=jnp.float32)
    mask = (labels[:, None] == labels[None, :]).astype(jnp.float32) * logits_mask
    neg_fill = jnp.finfo(jnp.float32).min

    def lse(x, m):
        xm = jnp.where(m > 0, x, neg_fill)
        mx = jnp.max(xm, axis=1, keepdims=True)
        return (mx + jnp.log(jnp.sum(jnp.exp(xm - mx), axis=1, keepdims=True)))[:, 0]

    log_prob = lse(logits, mask) - lse(logits, logits_mask)
    n_pos = (mask.sum(1) >= 1).astype(jnp.float32)
    return jnp.sum(-(log_prob * n_pos)) / (n_pos.sum() + 1e-8)


def _check(got, ref, tol=5e-2):
    # bf16 MXU path vs. pure-f32 reference: allow ~1e-2-level perturbation.
    g, r = float(got), float(ref)
    assert not jnp.isnan(got), "loss is NaN"
    assert abs(g - r) <= tol * (1.0 + abs(r)), (g, r)


if __name__ == "__main__":
    key = jax.random.PRNGKey(0)
    kf1, kl1, kf2, kl2 = jax.random.split(key, 4)

    # 1) Tiny shape (single tile, grid (1,1)) — matches the module's scale.
    B1, D1 = 8, 32
    f1 = jax.random.normal(kf1, (B1, D1), dtype=jnp.float32)
    l1 = jax.random.randint(kl1, (B1,), 0, 3, dtype=jnp.int32)
    loss1 = supcon_loss(f1, l1, temperature=0.2)
    jax.block_until_ready(loss1)
    _check(loss1, _supcon_loss_ref(f1, l1, temperature=0.2))

    # 2) Tiled online-LSE path with VMEM-resident contrast feats, grid (2, 2).
    B2, D2 = 256, 32
    f2 = jax.random.normal(kf2, (B2, D2), dtype=jnp.float32)
    l2 = jax.random.randint(kl2, (B2,), 0, 8, dtype=jnp.int32)
    ref2 = _supcon_loss_ref(f2, l2, temperature=0.2)
    loss2 = supcon_loss(f2, l2, temperature=0.2, block_q=128, block_k=128)
    jax.block_until_ready(loss2)
    _check(loss2, ref2)

    # 3) Same shape through the streamed (non-resident) contrast path.
    loss3 = supcon_loss(f2, l2, temperature=0.2, block_q=128, block_k=128,
                        k_resident=False)
    jax.block_until_ready(loss3)
    _check(loss3, ref2)

    print("KERNEL_OK")
</pallas_src>

<mosaic_0001>
module attributes {stable_mosaic.version = 11 : i64} {
  func.func @_supcon_kernel(%arg0: i32, %arg1: i32, %arg2: memref<8x1xi32, #tpu.memory_space<vmem>>, %arg3: memref<1x8xi32, #tpu.memory_space<vmem>>, %arg4: memref<8x32xbf16, #tpu.memory_space<vmem>>, %arg5: memref<8x32xbf16, #tpu.memory_space<vmem>>, %arg6: memref<8x128xf32, #tpu.memory_space<vmem>>, %arg7: memref<8x1xf32, #tpu.memory_space<vmem>>, %arg8: memref<8x1xf32, #tpu.memory_space<vmem>>, %arg9: memref<8x1xf32, #tpu.memory_space<vmem>>, %arg10: memref<8x1xf32, #tpu.memory_space<vmem>>) attributes {dimension_semantics = [#tpu.dimension_semantics<parallel>, #tpu.dimension_semantics<arbitrary>], iteration_bounds = array<i64: 1, 1>, scalar_prefetch = 0 : i64, scratch_operands = 4 : i64, tpu.core_type = #tpu.core_type<tc>, window_params = [{transform_indices = @transform_0, window_bounds = array<i64: 8, 1>}, {transform_indices = @transform_1, window_bounds = array<i64: 1, 8>}, {transform_indices = @transform_2, window_bounds = array<i64: 8, 32>}, {pipeline_mode = #tpu.pipeline_mode<synchronous>, transform_indices = @transform_3, window_bounds = array<i64: 8, 32>}, {transform_indices = @transform_4, window_bounds = array<i64: 8, 128>}]} {
    %c0_i32 = arith.constant 0 : i32
    %0 = arith.cmpi eq, %arg1, %c0_i32 : i32
    %1 = arith.extui %0 : i1 to i32
    %c0_i32_0 = arith.constant 0 : i32
    %2 = arith.cmpi ne, %1, %c0_i32_0 : i32
    scf.if %2 {
      %cst_33 = arith.constant 0xFF800000 : f32
      %58 = vector.broadcast %cst_33 : f32 to vector<8x1xf32>
      %c0_34 = arith.constant 0 : index
      %c0_35 = arith.constant 0 : index
      %59 = vector.load %arg7[%c0_34, %c0_35] : memref<8x1xf32, #tpu.memory_space<vmem>>, vector<8x1xf32>
      tpu.vector_store %arg7[%c0_34, %c0_35], %58 {strides = array<i32>} : memref<8x1xf32, #tpu.memory_space<vmem>>, vector<8x1xf32>,
      %cst_36 = arith.constant 0.000000e+00 : f32
      %60 = vector.broadcast %cst_36 : f32 to vector<8x1xf32>
      %c0_37 = arith.constant 0 : index
      %c0_38 = arith.constant 0 : index
      %61 = vector.load %arg8[%c0_37, %c0_38] : memref<8x1xf32, #tpu.memory_space<vmem>>, vector<8x1xf32>
      tpu.vector_store %arg8[%c0_37, %c0_38], %60 {strides = array<i32>} : memref<8x1xf32, #tpu.memory_space<vmem>>, vector<8x1xf32>,
      %cst_39 = arith.constant 0.000000e+00 : f32
      %62 = vector.broadcast %cst_39 : f32 to vector<8x1xf32>
      %c0_40 = arith.constant 0 : index
      %c0_41 = arith.constant 0 : index
      %63 = vector.load %arg9[%c0_40, %c0_41] : memref<8x1xf32, #tpu.memory_space<vmem>>, vector<8x1xf32>
      tpu.vector_store %arg9[%c0_40, %c0_41], %62 {strides = array<i32>} : memref<8x1xf32, #tpu.memory_space<vmem>>, vector<8x1xf32>,
      %cst_42 = arith.constant 0.000000e+00 : f32
      %64 = vector.broadcast %cst_42 : f32 to vector<8x1xf32>
      %c0_43 = arith.constant 0 : index
      %c0_44 = arith.constant 0 : index
      %65 = vector.load %arg10[%c0_43, %c0_44] : memref<8x1xf32, #tpu.memory_space<vmem>>, vector<8x1xf32>
      tpu.vector_store %arg10[%c0_43, %c0_44], %64 {strides = array<i32>} : memref<8x1xf32, #tpu.memory_space<vmem>>, vector<8x1xf32>,
    } else {
    }
    %c8_i32 = arith.constant 8 : i32
    %3 = arith.muli %arg1, %c8_i32 : i32
    %4 = tpu.assume_multiple %3, 8 : i32
    %5 = arith.index_cast %4 : i32 to index
    %c0 = arith.constant 0 : index
    %6 = vector.load %arg5[%5, %c0] : memref<8x32xbf16, #tpu.memory_space<vmem>>, vector<8x32xbf16>
    %c0_1 = arith.constant 0 : index
    %c0_2 = arith.constant 0 : index
    %7 = vector.load %arg4[%c0_1, %c0_2] : memref<8x32xbf16, #tpu.memory_space<vmem>>, vector<8x32xbf16>
    "tpu.trace_start"() <{level = 10 : i32, message = "qd,kd->qk"}> : () -> ()
    %cst = arith.constant dense<0.000000e+00> : vector<8x8xf32>
    %8 = tpu.matmul %7, %6, %cst {dimension_numbers = #tpu.dot_dimension_numbers<[1], [1], [0], [0], [0, 0, 1, 0], [], []>} : vector<8x32xbf16>, vector<8x32xbf16>, vector<8x8xf32> -> vector<8x8xf32>
    "tpu.trace_stop"() : () -> ()
    %9 = tpu.iota {dimensions = array<i32: 1>} : vector<8x8xi32>
    %10 = tpu.iota {dimensions = array<i32: 0>} : vector<8x8xi32>
    %11 = arith.subi %9, %10 : vector<8x8xi32>
    %c8_i32_3 = arith.constant 8 : i32
    %12 = arith.muli %arg0, %c8_i32_3 : i32
    %c8_i32_4 = arith.constant 8 : i32
    %13 = arith.muli %arg1, %c8_i32_4 : i32
    %14 = arith.subi %12, %13 : i32
    %15 = vector.broadcast %14 : i32 to vector<8x8xi32>
    %16 = arith.cmpi eq, %11, %15 : vector<8x8xi32>
    %cst_5 = arith.constant 0xFF800000 : f32
    %17 = vector.broadcast %cst_5 : f32 to vector<8x8xf32>
    %18 = arith.select %16, %17, %8 : vector<8x8xi1>, vector<8x8xf32>
    %c0_6 = arith.constant 0 : index
    %c0_7 = arith.constant 0 : index
    %19 = vector.load %arg2[%c0_6, %c0_7] : memref<8x1xi32, #tpu.memory_space<vmem>>, vector<8x1xi32>
    %c0_8 = arith.constant 0 : index
    %c0_9 = arith.constant 0 : index
    %20 = vector.load %arg3[%c0_8, %c0_9] : memref<1x8xi32, #tpu.memory_space<vmem>>, vector<1x8xi32>
    %21 = vector.broadcast %19 : vector<8x1xi32> to vector<8x8xi32>
    %22 = vector.broadcast %20 : vector<1x8xi32> to vector<8x8xi32>
    %23 = arith.cmpi eq, %21, %22 : vector<8x8xi32>
    %c0_10 = arith.constant 0 : index
    %c0_11 = arith.constant 0 : index
    %24 = vector.load %arg7[%c0_10, %c0_11] : memref<8x1xf32, #tpu.memory_space<vmem>>, vector<8x1xf32>
    %cst_12 = arith.constant dense<0xFF800000> : vector<8xf32>
    %25 = vector.multi_reduction <maximumf>, %18, %cst_12 [1] : vector<8x8xf32> to vector<8xf32>
    %26 = vector.shape_cast %25 : vector<8xf32> to vector<8x1xf32>
    %27 = arith.maximumf %24, %26 : vector<8x1xf32>
    %28 = arith.subf %24, %27 : vector<8x1xf32>
    %29 = math.exp %28 : vector<8x1xf32>
    %30 = vector.broadcast %27 : vector<8x1xf32> to vector<8x8xf32>
    %31 = arith.subf %18, %30 : vector<8x8xf32>
    %32 = math.exp %31 : vector<8x8xf32>
    %c0_13 = arith.constant 0 : index
    %c0_14 = arith.constant 0 : index
    %33 = vector.load %arg8[%c0_13, %c0_14] : memref<8x1xf32, #tpu.memory_space<vmem>>, vector<8x1xf32>
    %34 = arith.mulf %29, %33 : vector<8x1xf32>
    %cst_15 = arith.constant dense<0.000000e+00> : vector<8xf32>
    %35 = vector.multi_reduction <add>, %32, %cst_15 [1] : vector<8x8xf32> to vector<8xf32>
    %36 = vector.shape_cast %35 : vector<8xf32> to vector<8x1xf32>
    %37 = arith.addf %34, %36 : vector<8x1xf32>
    %c0_16 = arith.constant 0 : index
    %c0_17 = arith.constant 0 : index
    %38 = vector.load %arg8[%c0_16, %c0_17] : memref<8x1xf32, #tpu.memory_space<vmem>>, vector<8x1xf32>
    tpu.vector_store %arg8[%c0_16, %c0_17], %37 {strides = array<i32>} : memref<8x1xf32, #tpu.memory_space<vmem>>, vector<8x1xf32>,
    %c0_18 = arith.constant 0 : index
    %c0_19 = arith.constant 0 : index
    %39 = vector.load %arg9[%c0_18, %c0_19] : memref<8x1xf32, #tpu.memory_space<vmem>>, vector<8x1xf32>
    %40 = arith.mulf %29, %39 : vector<8x1xf32>
    %cst_20 = arith.constant 0.000000e+00 : f32
    %41 = vector.broadcast %cst_20 : f32 to vector<8x8xf32>
    %42 = arith.select %23, %32, %41 : vector<8x8xi1>, vector<8x8xf32>
    %cst_21 = arith.constant dense<0.000000e+00> : vector<8xf32>
    %43 = vector.multi_reduction <add>, %42, %cst_21 [1] : vector<8x8xf32> to vector<8xf32>
    %44 = vector.shape_cast %43 : vector<8xf32> to vector<8x1xf32>
    %45 = arith.addf %40, %44 : vector<8x1xf32>
    %c0_22 = arith.constant 0 : index
    %c0_23 = arith.constant 0 : index
    %46 = vector.load %arg9[%c0_22, %c0_23] : memref<8x1xf32, #tpu.memory_space<vmem>>, vector<8x1xf32>
    tpu.vector_store %arg9[%c0_22, %c0_23], %45 {strides = array<i32>} : memref<8x1xf32, #tpu.memory_space<vmem>>, vector<8x1xf32>,
    %c0_24 = arith.constant 0 : index
    %c0_25 = arith.constant 0 : index
    %47 = vector.load %arg10[%c0_24, %c0_25] : memref<8x1xf32, #tpu.memory_space<vmem>>, vector<8x1xf32>
    %48 = arith.extui %23 : vector<8x8xi1> to vector<8x8xi32>
    %49 = arith.sitofp %48 : vector<8x8xi32> to vector<8x8xf32>
    %cst_26 = arith.constant dense<0.000000e+00> : vector<8xf32>
    %50 = vector.multi_reduction <add>, %49, %cst_26 [1] : vector<8x8xf32> to vector<8xf32>
    %51 = vector.shape_cast %50 : vector<8xf32> to vector<8x1xf32>
    %52 = arith.addf %47, %51 : vector<8x1xf32>
    %c0_27 = arith.constant 0 : index
    %c0_28 = arith.constant 0 : index
    %53 = vector.load %arg10[%c0_27, %c0_28] : memref<8x1xf32, #tpu.memory_space<vmem>>, vector<8x1xf32>
    tpu.vector_store %arg10[%c0_27, %c0_28], %52 {strides = array<i32>} : memref<8x1xf32, #tpu.memory_space<vmem>>, vector<8x1xf32>,
    %c0_29 = arith.constant 0 : index
    %c0_30 = arith.constant 0 : index
    %54 = vector.load %arg7[%c0_29, %c0_30] : memref<8x1xf32, #tpu.memory_space<vmem>>, vector<8x1xf32>
    tpu.vector_store %arg7[%c0_29, %c0_30], %27 {strides = array<i32>} : memref<8x1xf32, #tpu.memory_space<vmem>>, vector<8x1xf32>,
    %c0_i32_31 = arith.constant 0 : i32
    %55 = arith.cmpi eq, %arg1, %c0_i32_31 : i32
    %56 = arith.extui %55 : i1 to i32
    %c0_i32_32 = arith.constant 0 : i32
    %57 = arith.cmpi ne, %56, %c0_i32_32 : i32
    scf.if %57 {
      %c0_33 = arith.constant 0 : index
      %c0_34 = arith.constant 0 : index
      %58 = vector.load %arg8[%c0_33, %c0_34] : memref<8x1xf32, #tpu.memory_space<vmem>>, vector<8x1xf32>
      %c0_35 = arith.constant 0 : index
      %c0_36 = arith.constant 0 : index
      %59 = vector.load %arg9[%c0_35, %c0_36] : memref<8x1xf32, #tpu.memory_space<vmem>>, vector<8x1xf32>
      %cst_37 = arith.constant 1.17549435E-38 : f32
      %60 = vector.broadcast %cst_37 : f32 to vector<8x1xf32>
      %61 = arith.maximumf %59, %60 : vector<8x1xf32>
      %c0_38 = arith.constant 0 : index
      %c0_39 = arith.constant 0 : index
      %62 = vector.load %arg10[%c0_38, %c0_39] : memref<8x1xf32, #tpu.memory_space<vmem>>, vector<8x1xf32>
      %cst_40 = arith.constant 2.000000e+00 : f32
      %63 = vector.broadcast %cst_40 : f32 to vector<8x1xf32>
      %64 = arith.cmpf oge, %62, %63 : vector<8x1xf32>
      %65 = math.log %58 : vector<8x1xf32>
      %66 = math.log %61 : vector<8x1xf32>
      %67 = arith.subf %65, %66 : vector<8x1xf32>
      %cst_41 = arith.constant 0.000000e+00 : f32
      %68 = vector.broadcast %cst_41 : f32 to vector<8x1xf32>
      %69 = arith.select %64, %67, %68 : vector<8x1xi1>, vector<8x1xf32>
      %70 = arith.extui %64 : vector<8x1xi1> to vector<8x1xi32>
      %71 = arith.sitofp %70 : vector<8x1xi32> to vector<8x1xf32>
      %72 = tpu.iota {dimensions = array<i32: 1>} : vector<8x128xi32>
      %c0_i32_42 = arith.constant 0 : i32
      %73 = vector.broadcast %c0_i32_42 : i32 to vector<8x128xi32>
      %74 = arith.cmpi eq, %72, %73 : vector<8x128xi32>
      %c1_i32 = arith.constant 1 : i32
      %75 = vector.broadcast %c1_i32 : i32 to vector<8x128xi32>
      %76 = arith.cmpi eq, %72, %75 : vector<8x128xi32>
      %cst_43 = arith.constant 0.000000e+00 : f32
      %77 = vector.shape_cast %71 : vector<8x1xf32> to vector<8x1xf32>
      %78 = vector.broadcast %77 : vector<8x1xf32> to vector<8x128xf32>
      %79 = vector.broadcast %cst_43 : f32 to vector<8x128xf32>
      %80 = arith.select %76, %78, %79 : vector<8x128xi1>, vector<8x128xf32>
      %81 = vector.shape_cast %69 : vector<8x1xf32> to vector<8x1xf32>
      %82 = vector.broadcast %81 : vector<8x1xf32> to vector<8x128xf32>
      %83 = arith.select %74, %82, %80 : vector<8x128xi1>, vector<8x128xf32>
      %c0_44 = arith.constant 0 : index
      %c0_45 = arith.constant 0 : index
      %84 = vector.load %arg6[%c0_44, %c0_45] : memref<8x128xf32, #tpu.memory_space<vmem>>, vector<8x128xf32>
      tpu.vector_store %arg6[%c0_44, %c0_45], %83 {strides = array<i32>} : memref<8x128xf32, #tpu.memory_space<vmem>>, vector<8x128xf32>,
    } else {
    }
    return
  }
  func.func @transform_0(%arg0: i32, %arg1: i32) -> (i32, i32) {
    %c0_i32 = arith.constant 0 : i32
    %c0_i32_0 = arith.constant 0 : i32
    return %arg0, %c0_i32 : i32, i32
  }
  func.func @transform_1(%arg0: i32, %arg1: i32) -> (i32, i32) {
    %c0_i32 = arith.constant 0 : i32
    %c0_i32_0 = arith.constant 0 : i32
    return %c0_i32, %arg1 : i32, i32
  }
  func.func @transform_2(%arg0: i32, %arg1: i32) -> (i32, i32) {
    %c0_i32 = arith.constant 0 : i32
    %c0_i32_0 = arith.constant 0 : i32
    return %arg0, %c0_i32 : i32, i32
  }
  func.func @transform_3(%arg0: i32, %arg1: i32) -> (i32, i32) {
    %c0_i32 = arith.constant 0 : i32
    %c0_i32_0 = arith.constant 0 : i32
    %c0_i32_1 = arith.constant 0 : i32
    return %c0_i32, %c0_i32_0 : i32, i32
  }
  func.func @transform_4(%arg0: i32, %arg1: i32) -> (i32, i32) {
    %c0_i32 = arith.constant 0 : i32
    %c0_i32_0 = arith.constant 0 : i32
    return %arg0, %c0_i32 : i32, i32
  }
}

</mosaic_0001>

<bundles_post_ra>
// kernel: tpu_custom_call.1
= control target key start
LH: loop header
LB: loop body
LE: loop exit
PB: predicated region body
PF: predicated region fallthrough
CT: control target
= control target key end

     0   :  { %vm35_vm0 = vcmask 261120   ;;  %s269_s0 = inlined_call_operand.vmem [shape: s32[8,1], index: 0, kind: input, shape index: {}]   ;;  %s270_s1 = inlined_call_operand.vmem [shape: s32[1,8], index: 1, kind: input, shape index: {}]   ;;  %s271_s2 = inlined_call_operand.vmem [shape: bf16[8,32], index: 2, kind: input, shape index: {}]   ;;  %s272_s3 = inlined_call_operand.vmem [shape: bf16[8,32], index: 3, kind: input, shape index: {}]   ;;  %s273_s4 = inlined_call_operand.hbm [shape: f32[8,128], index: 4, kind: output, shape index: {}]  }
   0x1   :  { %v33_v0 = vld [vmem:[%s272_s3] sm:$0xf] }
   0x2   :  { %v40_v1 = vsel %vm35_vm0, %v33_v0, 0 }
   0x3   :  { %9 = vsyncpa [#allocation7], 0  ;;  %49 = vmatpush.bf16.xpose.msra.mxu0 %v40_v1  ;;  %v34_v2 = vld [vmem:[%s271_s2] sm:$0xf]  ;;  %v55_v3 = vlaneseq  ;;  %vm73_vm2 = vcmask 64512   ;;  %vm23_vm3 = vcmask 7168  }
   0x4   :  { %v208_v11 = vmov -inf   ;;  %v209_v12 = vmov 0   ;;  %v210_v13 = vmov 0.0   ;;  %v65_v14 = vld [vmem:[%s269_s0] sm:$0xff]  ;;  %s211_s0 = smov [#allocation6]   ;;  %s152_s23 = sshll.u32 %s273_s4, 4  ;;  %s153_s23 = int_to_ptr.hbm [resolvable:$true] %s152_s23 }
   0x5   :  { %v243_v4 = vand.u32 127, %v55_v3  ;;  %v58_v5 = vshrl.u32 %v55_v3, 7  ;;  %24 = vst.msk [vmem:[#allocation2] sm:$0xff] %vm23_vm3, %v208_v11  ;;  %170 = vset.pattern.permute.xlu0 %v209_v12  ;;  %171 = vset.pattern.permute.xlu1 %v209_v12  ;;  %v173_v22 = vld [vmem:[%s270_s1] ss:$0 sm:$0xff]  ;;  %s150_s1 = sshll.u32 %s211_s0, 4  ;;  %s151_s1 = int_to_ptr.vmem [resolvable:$true] %s150_s1 }
   0x6   :  { %172 = vset.pattern.permute.xlu2 %v209_v12  ;;  %25 = vst.msk [vmem:[#allocation3] sm:$0xff] %vm23_vm3, %v210_v13  ;;  %68 = vperm.xlu1 %171, %v65_v14  }
   0x7   :  { %v59_v6 = vsub.s32 %v243_v4, %v58_v5  ;;  %26 = vst.msk [vmem:[#allocation4] sm:$0xff] %vm23_vm3, %v210_v13  ;;  %vm131_vm6 = vcmp.eq.s32.totalorder %v243_v4, 1  ;;  %vm130_vm7 = vcmp.eq.s32.totalorder %v243_v4, 0 }
   0x8   :  { %27 = vst.msk [vmem:[#allocation5] sm:$0xff] %vm23_vm3, %v210_v13 }
   0x9   :  { %vm63_vm1 = vcmp.eq.s32.totalorder %v59_v6, 0 }
   0xa   :  { %163 = vmatmul.msk.bf16.vlgmr.msra.gmra.mxu0 %vm35_vm0, %v34_v2 }
   0xc   :  { %v72_v15 = vld [vmem:[#allocation2] sm:$0xff] }
   0xd   :  { %v89_v32 = vld [vmem:[#allocation3] sm:$0xff] }
   0xe   :  { %v97_v33 = vld [vmem:[#allocation4] sm:$0xff] }
   0xf   :  { %v105_v40 = vld [vmem:[#allocation5] sm:$0xff] }
  0x78   :  { %v69_v23 = vpop.permute.xlu1 %68 }
  0x79   :  { %vm71_vm4 = vcmp.eq.s32.totalorder %v69_v23, %v173_v22 }
  0x7a   :  { %v164_v28 = vsel %vm71_vm4, 1.0, %v210_v13 }
  0x7b   :  { %v108_v29 = vsel %vm73_vm2, %v164_v28, 0.0 }
  0x87   :  { %v51_v7 = vpop.f32.mrf.mxu0 }
  0x88   :  { %v64_v8 = vsel %vm63_vm1, -inf, %v51_v7 }
  0x89   :  { %v74_v9 = vsel %vm73_vm2, %v64_v8, -inf }
  0x8a   :  { %75 = vmax.xlane.f32.xlu0 %v74_v9 }
  0x8f   :  { %v53_v10 = vpop.f32.mrf.mxu0 }
  0xfd   :  { %v76_v16 = vpop.xlane.xlu0 %75 }
  0xfe   :  { %v77_v17 = vmax.f32 %v72_v15, %v76_v16 }
 0x100   :  { %v78_v18 = vsub.f32 %v72_v15, %v77_v17  ;;  %113 = vst.msk [vmem:[#allocation2] sm:$0xff] %vm23_vm3, %v77_v17  ;;  %83 = vperm.xlu0 %170, %v77_v17  }
 0x102   :  { %v79_v30 = vmul.f32 1.442695, %v78_v18 }
 0x172   :  { %v84_v19 = vpop.permute.xlu0 %83 }
 0x173   :  { %v86_v20 = vsub.f32 %v64_v8, %v84_v19 }
 0x175   :  { %v87_v21 = vmul.f32 1.442695, %v86_v20 }
 0x177   :  { %174 = vpow2.f32 %v87_v21 }
 0x178   :  { %176 = vpow2.f32 %v79_v30 }
 0x17d   :  { %v175_v24 = vpop.eup %174 }
 0x17e   :  { %v91_v25 = vsel %vm73_vm2, %v175_v24, 0.0  ;;  %v99_v26 = vsel %vm71_vm4, %v175_v24, 0.0  ;;  %v177_v31 = vpop.eup %176 }
 0x17f   :  { %92 = vadd.xlane.f32.xlu2 %v91_v25  ;;  %v100_v27 = vsel %vm73_vm2, %v99_v26, 0.0  ;;  %v90_v34 = vmul.f32 %v177_v31, %v89_v32  ;;  %v98_v36 = vmul.f32 %v177_v31, %v97_v33 }
 0x180   :  { %101 = vadd.xlane.f32.xlu1 %v100_v27 }
 0x187   :  { %109 = vadd.xlane.f32.xlu2 %v108_v29 }
 0x1f2   :  { %v93_v35 = vpop.xlane.xlu2 %92 }
 0x1f3   :  { %v94_v37 = vadd.f32 %v93_v35, %v90_v34  ;;  %v102_v38 = vpop.xlane.xlu1 %101 }
 0x1f4   :  { %v103_v39 = vadd.f32 %v102_v38, %v98_v36 }
 0x1f5   :  { %96 = vst.msk [vmem:[#allocation3] sm:$0xff] %vm23_vm3, %v94_v37 }
 0x1f6   :  { %104 = vst.msk [vmem:[#allocation4] sm:$0xff] %vm23_vm3, %v103_v39 }
 0x1fa   :  { %v110_v41 = vpop.xlane.xlu2 %109 }
 0x1fb   :  { %v111_v42 = vadd.f32 %v110_v41, %v105_v40 }
 0x1fc   :  { %v117_v43 = vld [vmem:[#allocation3] sm:$0xff] }
 0x1fd   :  { %112 = vst.msk [vmem:[#allocation5] sm:$0xff] %vm23_vm3, %v111_v42  ;;  %v118_v44 = vld [vmem:[#allocation4] sm:$0xff]  ;;  %178 = vlog2.f32 %v117_v43 }
 0x1fe   :  { %v119_v45 = vmax.f32 %v118_v44, 1.1754944e-38 }
 0x200   :  { %180 = vlog2.f32 %v119_v45 }
 0x203   :  { %v179_v47 = vpop.eup %178 }
 0x204   :  { %v120_v46 = vld [vmem:[#allocation5] sm:$0xff]  ;;  %v123_v51 = vmul.f32 0.6931472, %v179_v47 }
 0x205   :  { %vm121_vm5 = vcmp.ge.f32.partialorder %v120_v46, 2.0 }
 0x206   :  { %v181_v48 = vpop.eup %180  ;;  %v165_v49 = vsel %vm121_vm5, 1.0, %v210_v13 }
 0x207   :  { %134 = vperm.xlu2 %172, %v165_v49   ;;  %v125_v50 = vmul.f32 0.6931472, %v181_v48 }
 0x209   :  { %v126_v52 = vsub.f32 %v123_v51, %v125_v50 }
 0x20b   :  { %v127_v53 = vsel %vm121_vm5, %v126_v52, 0.0 }
 0x20f   :  { %140 = vperm.xlu2 %172, %v127_v53  }
 0x261   :  { %v135_v54 = vpop.permute.xlu2 %134 }
 0x262   :  { %v137_v55 = vsel %vm131_vm6, %v135_v54, 0.0 }
 0x269   :  { %v141_v56 = vpop.permute.xlu2 %140 }
 0x26a   :  { %v143_v57 = vsel %vm130_vm7, %v141_v56, %v137_v55 }
 0x26b   :  { %144 = vst [vmem:[#allocation6] sm:$0xff] %v143_v57 }
 0x26c   :  { %155 = dma.vmem_to_hbm [thread:$0]  %s151_s1, 128, %s153_s23, [#allocation7]  }
 0x26d   :  { %206 = dma.done.wait [#allocation7], 128  }
 0x26e   :  { %207 = vsyncadd [#allocation7], 4294967168 }
 0x26f   :  { %160 = vsyncpa [#allocation7], 1 }

</bundles_post_ra>
